<compile_context>
chip_gen: v7x
topology: tpu7x:2x2x1
jax: 0.10.0
libtpu: 0.0.40
codegen_flags: <defaults>
</compile_context>

<pallas_src>
import jax
import jax.numpy as jnp
from jax.experimental import pallas as pl
from jax.experimental.pallas import tpu as pltpu


def mlp_kernel(x_ref, w1_ref, b1_ref, w2_ref, b2_ref, w3_ref, b3_ref, o_ref):
    xT = x_ref[...]            # (in_dim, block_b)  batch on lanes
    w1 = w1_ref[...]           # (hid, in_dim)
    in_dim = xT.shape[0]

    # ---- Layer 1: K = in_dim (tiny) -> VPU broadcast-FMA, not the MXU. ----
    h1 = w1[:, 0:1] * xT[0:1, :]                       # (hid, block_b)
    for k in range(1, in_dim):                         # static, unrolled
        h1 = h1 + w1[:, k:k + 1] * xT[k:k + 1, :]
    h1 = jnp.maximum(h1 + b1_ref[...], 0.0)            # bias (hid, 1) broadcasts

    # ---- Layer 2: (hid, hid) @ (hid, block_b) on the MXU, f32 accumulation.
    # If w2 was cast to bf16 in the wrapper, feed bf16 operands (MXU-native on
    # v6e/v7x) and keep the f32 accumulator; bias add stays f32.
    w2 = w2_ref[...]
    h1_mm = h1.astype(w2.dtype) if w2.dtype != h1.dtype else h1
    h2 = jnp.dot(w2, h1_mm, preferred_element_type=jnp.float32) + b2_ref[...]
    h2 = jnp.maximum(h2, 0.0)

    # ---- Layer 3: out_dim == 1 -> keep it OFF the MXU.  w3 arrives as a
    # (hid, 1) column; VPU multiply + sublane (XLU) reduce over the hidden dim
    # gives the lane-dense (1, block_b) output row directly.
    if o_ref.shape[0] == 1 and w3_ref.shape[1] == 1:
        out = jnp.sum(w3_ref[...] * h2, axis=0, keepdims=True) + b3_ref[...]
    else:
        # Generic fallback for out_dim > 1 (not used by this module's default).
        out = jnp.dot(w3_ref[...], h2, preferred_element_type=jnp.float32) + b3_ref[...]

    o_ref[...] = out.astype(o_ref.dtype)


def _round_up(x, m):
    return ((x + m - 1) // m) * m


def _batch_tiling(B, block_b):
    """Pick a lane-aligned batch tile and grid size.

    Guarantees >= 2 grid steps whenever there are >= 256 (padded) rows so the
    "parallel" grid axis can shard across both v7x TensorCores; evens out tile
    sizes to minimize zero-padding.
    """
    Bp = _round_up(B, 128)                                   # lane alignment
    bb_cap = max(128, _round_up(min(block_b, Bp), 128))
    n_steps = pl.cdiv(Bp, bb_cap)
    if n_steps < 2 and Bp >= 256:
        n_steps = 2                                          # v7x megacore split
    bb = _round_up(pl.cdiv(Bp, n_steps), 128)
    return bb, n_steps * bb, n_steps


def mlp_controller_forward(x, params, *, block_b=4096, layer2_bf16=True):
    """x: (B, input_dim) float32.  params: PyTorch-layout weights/biases
    (w: (out_features, in_features), b: (out_features,)).  Returns (B, output_dim).

    layer2_bf16: cast the dominant 64x64 matmul's operands to bf16 (f32
    accumulation).  ~3x faster on the MXU-bound portion (v6e/v7x); slightly
    lower precision than the pure-f32 path.
    """
    w1, b1 = params["w1"], params["b1"]
    w2, b2 = params["w2"], params["b2"]
    w3, b3 = params["w3"], params["b3"]

    B, in_dim = x.shape
    hid = w1.shape[0]
    out_dim = w3.shape[0]

    bb, B_pad, n_steps = _batch_tiling(B, block_b)
    grid = (n_steps,)

    # Wrapper-side layout plumbing: batch onto lanes, zero-pad ragged batch.
    # (Padded columns produce garbage activations; sliced off below.)
    xT = jnp.transpose(x)                                    # (in_dim, B)
    if B_pad != B:
        xT = jnp.pad(xT, ((0, 0), (0, B_pad - B)))

    # Biases as (out, 1) columns so they broadcast over the batch lanes.
    b1c = b1.reshape(hid, 1)
    b2c = b2.reshape(hid, 1)
    b3c = b3.reshape(out_dim, 1)

    # Layer-2 operand dtype (bias / accumulation stay f32).
    w2_mm = w2.astype(jnp.bfloat16) if layer2_bf16 else w2

    # Layer-3 weight: (hid, 1) column for the VPU+XLU path when out_dim == 1.
    if out_dim == 1:
        w3_k = w3.reshape(hid, 1)
        w3_spec_shape = (hid, 1)
    else:
        w3_k = w3
        w3_spec_shape = (out_dim, hid)

    full = lambda shape: pl.BlockSpec(shape, lambda i: (0, 0))   # resident weights

    # Scheduler hint: this call is compute-heavy relative to its I/O.
    flops = 2 * B_pad * (in_dim * hid + hid * hid + hid * out_dim)
    w_bytes = 4 * (hid * in_dim + hid + hid * hid + hid + out_dim * hid + out_dim)
    bytes_accessed = 4 * B_pad * (in_dim + out_dim) + w_bytes
    cost = pl.CostEstimate(flops=int(flops), transcendentals=0,
                           bytes_accessed=int(bytes_accessed))

    oT = pl.pallas_call(
        mlp_kernel,
        out_shape=jax.ShapeDtypeStruct((out_dim, B_pad), x.dtype),
        grid_spec=pltpu.PrefetchScalarGridSpec(
            num_scalar_prefetch=0,
            grid=grid,
            in_specs=[
                pl.BlockSpec((in_dim, bb), lambda i: (0, i)),   # x^T tile
                full((hid, in_dim)),     # w1
                full((hid, 1)),          # b1
                full((hid, hid)),        # w2 (maybe bf16)
                full((hid, 1)),          # b2
                full(w3_spec_shape),     # w3 ((hid,1) column for out_dim==1)
                full((out_dim, 1)),      # b3
            ],
            out_specs=pl.BlockSpec((out_dim, bb), lambda i: (0, i)),
        ),
        compiler_params=pltpu.CompilerParams(
            dimension_semantics=("parallel",),
        ),
        cost_estimate=cost,
    )(xT, w1, b1c, w2_mm, b2c, w3_k, b3c)

    # Back to the PyTorch (B, out_dim) convention, dropping the pad columns.
    return jnp.transpose(oT[:, :B])


def init_params(key, input_dim=3, hidden_dim=64, output_dim=1):
    """PyTorch-default Linear init: uniform(-1/sqrt(fan_in), 1/sqrt(fan_in)).
    Weights stored in PyTorch layout (out_features, in_features)."""
    keys = jax.random.split(key, 6)

    def linear(kw, kb, fan_in, fan_out):
        bound = 1.0 / jnp.sqrt(jnp.asarray(fan_in, jnp.float32))
        w = jax.random.uniform(kw, (fan_out, fan_in), jnp.float32, -bound, bound)
        b = jax.random.uniform(kb, (fan_out,), jnp.float32, -bound, bound)
        return w, b

    w1, b1 = linear(keys[0], keys[1], input_dim, hidden_dim)
    w2, b2 = linear(keys[2], keys[3], hidden_dim, hidden_dim)
    w3, b3 = linear(keys[4], keys[5], hidden_dim, output_dim)
    return {"w1": w1, "b1": b1, "w2": w2, "b2": b2, "w3": w3, "b3": b3}


def reference_forward(x, p):
    h1 = jnp.maximum(x @ p["w1"].T + p["b1"], 0.0)
    h2 = jnp.maximum(h1 @ p["w2"].T + p["b2"], 0.0)
    return h2 @ p["w3"].T + p["b3"]


if __name__ == "__main__":
    key = jax.random.PRNGKey(0)
    k_x, k_p = jax.random.split(key)

    B, input_dim, hidden_dim, output_dim = 200, 3, 64, 1
    x = jax.random.normal(k_x, (B, input_dim), dtype=jnp.float32)
    params = init_params(k_p, input_dim, hidden_dim, output_dim)

    ref = reference_forward(x, params)

    # Exact-f32 path: ragged batch (200 -> 256) split into a 2-step parallel
    # grid (exercises the v7x megacore split); tight tolerance.
    out_f32 = jax.block_until_ready(
        mlp_controller_forward(x, params, layer2_bf16=False))
    assert out_f32.shape == (B, output_dim)
    assert jnp.allclose(out_f32, ref, atol=1e-5, rtol=1e-5), "f32 path mismatch"

    # bf16 layer-2 path (MXU-native on v6e/v7x): deliberate precision
    # trade-off, so compare with relaxed tolerances.
    out_bf16 = jax.block_until_ready(
        mlp_controller_forward(x, params, layer2_bf16=True))
    assert out_bf16.shape == (B, output_dim)
    assert jnp.allclose(out_bf16, ref, atol=5e-2, rtol=5e-2), "bf16 path mismatch"

    print("KERNEL_OK")
</pallas_src>

<mosaic_0001>
module attributes {stable_mosaic.version = 11 : i64} {
  func.func @mlp_kernel(%arg0: i32, %arg1: memref<3x128xf32, #tpu.memory_space<vmem>>, %arg2: memref<64x3xf32, #tpu.memory_space<vmem>>, %arg3: memref<64x1xf32, #tpu.memory_space<vmem>>, %arg4: memref<64x64xf32, #tpu.memory_space<vmem>>, %arg5: memref<64x1xf32, #tpu.memory_space<vmem>>, %arg6: memref<64x1xf32, #tpu.memory_space<vmem>>, %arg7: memref<1x1xf32, #tpu.memory_space<vmem>>, %arg8: memref<1x128xf32, #tpu.memory_space<vmem>>) attributes {dimension_semantics = [#tpu.dimension_semantics<parallel>], iteration_bounds = array<i64: 2>, scalar_prefetch = 0 : i64, scratch_operands = 0 : i64, tpu.core_type = #tpu.core_type<tc>, window_params = [{transform_indices = @transform_0, window_bounds = array<i64: 3, 128>}, {pipeline_mode = #tpu.pipeline_mode<synchronous>, transform_indices = @transform_1, window_bounds = array<i64: 64, 3>}, {pipeline_mode = #tpu.pipeline_mode<synchronous>, transform_indices = @transform_2, window_bounds = array<i64: 64, 1>}, {pipeline_mode = #tpu.pipeline_mode<synchronous>, transform_indices = @transform_3, window_bounds = array<i64: 64, 64>}, {pipeline_mode = #tpu.pipeline_mode<synchronous>, transform_indices = @transform_4, window_bounds = array<i64: 64, 1>}, {pipeline_mode = #tpu.pipeline_mode<synchronous>, transform_indices = @transform_5, window_bounds = array<i64: 64, 1>}, {pipeline_mode = #tpu.pipeline_mode<synchronous>, transform_indices = @transform_6, window_bounds = array<i64: 1, 1>}, {transform_indices = @transform_7, window_bounds = array<i64: 1, 128>}]} {
    %c0 = arith.constant 0 : index
    %c0_0 = arith.constant 0 : index
    %0 = vector.load %arg1[%c0, %c0_0] : memref<3x128xf32, #tpu.memory_space<vmem>>, vector<3x128xf32>
    %c0_1 = arith.constant 0 : index
    %c0_2 = arith.constant 0 : index
    %1 = vector.load %arg2[%c0_1, %c0_2] : memref<64x3xf32, #tpu.memory_space<vmem>>, vector<64x3xf32>
    %2 = vector.extract_strided_slice %1 {offsets = [0, 0], sizes = [64, 1], strides = [1, 1]} : vector<64x3xf32> to vector<64x1xf32>
    %3 = vector.extract_strided_slice %0 {offsets = [0, 0], sizes = [1, 128], strides = [1, 1]} : vector<3x128xf32> to vector<1x128xf32>
    %4 = vector.broadcast %2 : vector<64x1xf32> to vector<64x128xf32>
    %5 = vector.broadcast %3 : vector<1x128xf32> to vector<64x128xf32>
    %6 = arith.mulf %4, %5 : vector<64x128xf32>
    %7 = vector.extract_strided_slice %1 {offsets = [0, 1], sizes = [64, 1], strides = [1, 1]} : vector<64x3xf32> to vector<64x1xf32>
    %8 = vector.extract_strided_slice %0 {offsets = [1, 0], sizes = [1, 128], strides = [1, 1]} : vector<3x128xf32> to vector<1x128xf32>
    %9 = vector.broadcast %7 : vector<64x1xf32> to vector<64x128xf32>
    %10 = vector.broadcast %8 : vector<1x128xf32> to vector<64x128xf32>
    %11 = arith.mulf %9, %10 : vector<64x128xf32>
    %12 = arith.addf %6, %11 : vector<64x128xf32>
    %13 = vector.extract_strided_slice %1 {offsets = [0, 2], sizes = [64, 1], strides = [1, 1]} : vector<64x3xf32> to vector<64x1xf32>
    %14 = vector.extract_strided_slice %0 {offsets = [2, 0], sizes = [1, 128], strides = [1, 1]} : vector<3x128xf32> to vector<1x128xf32>
    %15 = vector.broadcast %13 : vector<64x1xf32> to vector<64x128xf32>
    %16 = vector.broadcast %14 : vector<1x128xf32> to vector<64x128xf32>
    %17 = arith.mulf %15, %16 : vector<64x128xf32>
    %18 = arith.addf %12, %17 : vector<64x128xf32>
    %c0_3 = arith.constant 0 : index
    %c0_4 = arith.constant 0 : index
    %19 = vector.load %arg3[%c0_3, %c0_4] : memref<64x1xf32, #tpu.memory_space<vmem>>, vector<64x1xf32>
    %20 = vector.broadcast %19 : vector<64x1xf32> to vector<64x128xf32>
    %21 = arith.addf %18, %20 : vector<64x128xf32>
    %cst = arith.constant 0.000000e+00 : f32
    %22 = vector.broadcast %cst : f32 to vector<64x128xf32>
    %23 = arith.maximumf %21, %22 : vector<64x128xf32>
    %c0_5 = arith.constant 0 : index
    %c0_6 = arith.constant 0 : index
    %24 = vector.load %arg4[%c0_5, %c0_6] : memref<64x64xf32, #tpu.memory_space<vmem>>, vector<64x64xf32>
    %cst_7 = arith.constant dense<0.000000e+00> : vector<64x128xf32>
    %25 = tpu.matmul %24, %23, %cst_7 {dimension_numbers = #tpu.dot_dimension_numbers<[1], [0], [0], [1], [0, 0, 1, 1], [], []>} : vector<64x64xf32>, vector<64x128xf32>, vector<64x128xf32> -> vector<64x128xf32>
    %c0_8 = arith.constant 0 : index
    %c0_9 = arith.constant 0 : index
    %26 = vector.load %arg5[%c0_8, %c0_9] : memref<64x1xf32, #tpu.memory_space<vmem>>, vector<64x1xf32>
    %27 = vector.broadcast %26 : vector<64x1xf32> to vector<64x128xf32>
    %28 = arith.addf %25, %27 : vector<64x128xf32>
    %cst_10 = arith.constant 0.000000e+00 : f32
    %29 = vector.broadcast %cst_10 : f32 to vector<64x128xf32>
    %30 = arith.maximumf %28, %29 : vector<64x128xf32>
    %c0_11 = arith.constant 0 : index
    %c0_12 = arith.constant 0 : index
    %31 = vector.load %arg6[%c0_11, %c0_12] : memref<64x1xf32, #tpu.memory_space<vmem>>, vector<64x1xf32>
    %32 = vector.broadcast %31 : vector<64x1xf32> to vector<64x128xf32>
    %33 = arith.mulf %32, %30 : vector<64x128xf32>
    %cst_13 = arith.constant dense<0.000000e+00> : vector<128xf32>
    %34 = vector.multi_reduction <add>, %33, %cst_13 [0] : vector<64x128xf32> to vector<128xf32>
    %35 = vector.shape_cast %34 : vector<128xf32> to vector<1x128xf32>
    %c0_14 = arith.constant 0 : index
    %c0_15 = arith.constant 0 : index
    %36 = vector.load %arg7[%c0_14, %c0_15] : memref<1x1xf32, #tpu.memory_space<vmem>>, vector<1x1xf32>
    %37 = vector.broadcast %36 : vector<1x1xf32> to vector<1x128xf32>
    %38 = arith.addf %35, %37 : vector<1x128xf32>
    %c0_16 = arith.constant 0 : index
    %c0_17 = arith.constant 0 : index
    %39 = vector.load %arg8[%c0_16, %c0_17] : memref<1x128xf32, #tpu.memory_space<vmem>>, vector<1x128xf32>
    tpu.vector_store %arg8[%c0_16, %c0_17], %38 {strides = array<i32>} : memref<1x128xf32, #tpu.memory_space<vmem>>, vector<1x128xf32>,
    return
  }
  func.func @transform_0(%arg0: i32) -> (i32, i32) {
    %c0_i32 = arith.constant 0 : i32
    %c0_i32_0 = arith.constant 0 : i32
    return %c0_i32, %arg0 : i32, i32
  }
  func.func @transform_1(%arg0: i32) -> (i32, i32) {
    %c0_i32 = arith.constant 0 : i32
    %c0_i32_0 = arith.constant 0 : i32
    %c0_i32_1 = arith.constant 0 : i32
    return %c0_i32, %c0_i32_0 : i32, i32
  }
  func.func @transform_2(%arg0: i32) -> (i32, i32) {
    %c0_i32 = arith.constant 0 : i32
    %c0_i32_0 = arith.constant 0 : i32
    %c0_i32_1 = arith.constant 0 : i32
    return %c0_i32, %c0_i32_0 : i32, i32
  }
  func.func @transform_3(%arg0: i32) -> (i32, i32) {
    %c0_i32 = arith.constant 0 : i32
    %c0_i32_0 = arith.constant 0 : i32
    %c0_i32_1 = arith.constant 0 : i32
    return %c0_i32, %c0_i32_0 : i32, i32
  }
  func.func @transform_4(%arg0: i32) -> (i32, i32) {
    %c0_i32 = arith.constant 0 : i32
    %c0_i32_0 = arith.constant 0 : i32
    %c0_i32_1 = arith.constant 0 : i32
    return %c0_i32, %c0_i32_0 : i32, i32
  }
  func.func @transform_5(%arg0: i32) -> (i32, i32) {
    %c0_i32 = arith.constant 0 : i32
    %c0_i32_0 = arith.constant 0 : i32
    %c0_i32_1 = arith.constant 0 : i32
    return %c0_i32, %c0_i32_0 : i32, i32
  }
  func.func @transform_6(%arg0: i32) -> (i32, i32) {
    %c0_i32 = arith.constant 0 : i32
    %c0_i32_0 = arith.constant 0 : i32
    %c0_i32_1 = arith.constant 0 : i32
    return %c0_i32, %c0_i32_0 : i32, i32
  }
  func.func @transform_7(%arg0: i32) -> (i32, i32) {
    %c0_i32 = arith.constant 0 : i32
    %c0_i32_0 = arith.constant 0 : i32
    return %c0_i32, %arg0 : i32, i32
  }
}

</mosaic_0001>

<bundles_post_ra>
// kernel: tpu_custom_call.1
= control target key start
LH: loop header
LB: loop body
LE: loop exit
PB: predicated region body
PF: predicated region fallthrough
CT: control target
= control target key end

     0   :  { %s1385_s0 = inlined_call_operand.vmem [shape: f32[3,256], index: 0, kind: input, shape index: {}]   ;;  %s1386_s1 = inlined_call_operand.vmem [shape: f32[64,3], index: 1, kind: input, shape index: {}]   ;;  %s1387_s2 = inlined_call_operand.vmem [shape: f32[64,1], index: 2, kind: input, shape index: {}]   ;;  %s1388_s3 = inlined_call_operand.vmem [shape: f32[64,64], index: 3, kind: input, shape index: {}]   ;;  %s1389_s4 = inlined_call_operand.vmem [shape: f32[64,1], index: 4, kind: input, shape index: {}]   ;;  %s1390_s5 = inlined_call_operand.vmem [shape: f32[64,1], index: 5, kind: input, shape index: {}]   ;;  %s1391_s6 = inlined_call_operand.<no memory space> [shape: f32[1,1], index: 6, kind: input, shape index: {}]   ;;  %s1392_s7 = inlined_call_operand.hbm [shape: f32[1,256], index: 7, kind: output, shape index: {}]  }
   0x1   :  { %v12_v0 = vstv %s1391_s6 }
   0x2   :  { %13 = vst [vmem:[#allocation2] sm:$0x1] %v12_v0 }
   0x3   :  { %14 = vsyncpa [#allocation4], 0 }
   0x4   :  { %16 = vsyncpa [#allocation4 + $0x1], 0  ;;  %s1099_s26 = smov 0   ;;  %s1101_s27 = smov 0  }
   0x5   :  { %s1103_s28 = smov 0   ;;  %s1105_s29 = smov 0  }
   0x6 LB: > { %s1120_s6 = sadd.s32 4294967295, %s1050_s29   ;;  %s847_s30 = sadd.s32 4294967294, %s1050_s29   ;;  %s1050_s29 = sphi %s1105_s29, %s1398_s29   ;;  %s1046_s28 = sphi %s1103_s28, %s1397_s28   ;;  %s1042_s27 = sphi %s1101_s27, %s1396_s27   ;;  %s1038_s26 = sphi %s1099_s26, %s1395_s26  }
   0x7   : > { %s1124_s8 = sadd.s32 1, %s1050_s29   ;;  %s181_s9 = sadd.s32 1, %s1046_s28 }
   0x8   : > { %s178_s10 = ssub.s32 %s1050_s29, %s1124_s8  ;;  %p191_p0 = scmp.ne.s32.totalorder %s1046_s28, %s1042_s27 }
   0x9   : > { %p179_p1 = scmp.eq.s32.totalorder %s178_s10, 0  ;;  %p192_p2 = scmp.eq.s32.totalorder %s1120_s6, 1 }
   0xa   : > { %p197_p3 = scmp.ne.s32.totalorder %s1042_s27, %s1038_s26  ;;  %p198_p4 = scmp.eq.s32.totalorder %s847_s30, 1 }
   0xb   : > { %s1135_s11 = scalar_select %p179_p1, %s1046_s28, %s181_s9  }
   0xc   : > { %p1137_p5 = por %p192_p2, %p191_p0  ;;  %p1141_p6 = por %p198_p4, %p197_p3 }
   0xd   : > { %p850_p7 = scmp.ge.s32.totalorder %s1050_s29, 1  ;;  %p241_p8 = scmp.lt.s32.totalorder %s1050_s29, 3 }
   0xf   : > { %p242_p9 = pnand %p850_p7, %p241_p8 }
  0x10   : > { %v276_v1 = vld [vmem:[%s1386_s1] sm:$0xff] (!%p242_p9)  ;;  %v1052_v2 = vmov (!%p242_p9), 2   ;;  %v1053_v3 = vmov (!%p242_p9), 1   ;;  %v278_v4 = vld [vmem:[%s1386_s1 + $0x10] sm:$0xff] (!%p242_p9)  ;;  %v277_v5 = vld [vmem:[%s1386_s1 + $0x8] sm:$0xff] (!%p242_p9)  ;;  %v1054_v8 = vmov (!%p242_p9), 0   ;;  %v324_v45 = vlaneseq (!%p242_p9) }
  0x11   : > { %245 = sbr.rel (%p242_p9) target bundleno = 506 (0x1fa), region = 48  ;;  %974 = vset.pattern.permute.xlu0 (!%p242_p9), %v1052_v2  ;;  %973 = vset.pattern.permute.xlu1 (!%p242_p9), %v1053_v3  ;;  %v281_v6 = vld [vmem:[%s1386_s1 + $0x28] sm:$0xff] (!%p242_p9)  ;;  %v280_v7 = vld [vmem:[%s1386_s1 + $0x20] sm:$0xff] (!%p242_p9)  ;;  %v283_v9 = vld [vmem:[%s1386_s1 + $0x38] sm:$0xff] (!%p242_p9)  ;;  %vm560_vm0 = vcmask (!%p242_p9), 523264   ;;  %p271_p10 = scmp.lt.s32.totalorder (!%p242_p9), %s1120_s6, 1 }
  0x12   : > { %389 = vperm.xlu0 (!%p242_p9), %974, %v276_v1   ;;  %337 = vperm.xlu1 (!%p242_p9), %973, %v276_v1   ;;  %v279_v10 = vld [vmem:[%s1386_s1 + $0x18] sm:$0xff] (!%p242_p9)  ;;  %v440_v11 = vld [vmem:[%s1387_s2] sm:$0xff] (!%p242_p9)  ;;  %v441_v12 = vld [vmem:[%s1387_s2 + $0x8] sm:$0xff] (!%p242_p9)  ;;  %v1267_v47 = vshrl.u32 (!%p242_p9), %v324_v45, 7  ;;  %s269_s24 = sand.u32 (!%p242_p9), 1, %s1042_s27   ;;  %s860_s25 = sshll.u32 (!%p242_p9), %s1120_s6, 4 }
  0x13   : > { %v282_v13 = vld [vmem:[%s1386_s1 + $0x30] sm:$0xff] (!%p242_p9)  ;;  %v444_v14 = vld [vmem:[%s1387_s2 + $0x20] sm:$0xff] (!%p242_p9)  ;;  %v447_v15 = vld [vmem:[%s1387_s2 + $0x38] sm:$0xff] (!%p242_p9)  ;;  %s1343_s15 = scalar_lea.hbm (!%p242_p9), %s1392_s7, %s860_s25  ;;  %s780_s16 = scalar_lea.sflag (!%p242_p9), [#allocation4], %s269_s24 }
  0x14   : > { %v513_v16 = vld [vmem:[%s1389_s4 + $0x8] sm:$0xff] (!%p242_p9)  ;;  %v515_v17 = vld [vmem:[%s1389_s4 + $0x18] sm:$0xff] (!%p242_p9)  ;;  %v442_v18 = vld [vmem:[%s1387_s2 + $0x10] sm:$0xff] (!%p242_p9)  ;;  %v370_v50 = vsub.s32 (!%p242_p9), 1, %v1267_v47  ;;  %v326_v51 = vsub.s32 (!%p242_p9), 0, %v1267_v47  ;;  %v422_v55 = vsub.s32 (!%p242_p9), 2, %v1267_v47 }
  0x15   : > { %v699_v19 = vld [vmem:[%s1390_s5 + $0x8] sm:$0xff] (!%p242_p9)  ;;  %v443_v20 = vld [vmem:[%s1387_s2 + $0x18] sm:$0xff] (!%p242_p9)  ;;  %v700_v21 = vld [vmem:[%s1390_s5 + $0x10] sm:$0xff] (!%p242_p9)  ;;  %s1055_s17 = smov (!%p242_p9), [#allocation3]  }
  0x16   : > { %397 = vperm.xlu0 (!%p242_p9), %974, %v278_v4   ;;  %341 = vperm.xlu1 (!%p242_p9), %973, %v277_v5   ;;  %v701_v22 = vld [vmem:[%s1390_s5 + $0x18] sm:$0xff] (!%p242_p9)  ;;  %v702_v23 = vld [vmem:[%s1390_s5 + $0x20] sm:$0xff] (!%p242_p9)  ;;  %v703_v24 = vld [vmem:[%s1390_s5 + $0x28] sm:$0xff] (!%p242_p9)  ;;  %s992_s18 = sshll.u32 (!%p242_p9), %s1055_s17, 4  ;;  %s993_s18 = int_to_ptr.vmem [resolvable:$false] %s992_s18 }
  0x17   : > { %v705_v25 = vld [vmem:[%s1390_s5 + $0x38] sm:$0xff] (!%p242_p9)  ;;  %v445_v26 = vld [vmem:[%s1387_s2 + $0x28] sm:$0xff] (!%p242_p9)  ;;  %v446_v27 = vld [vmem:[%s1387_s2 + $0x30] sm:$0xff] (!%p242_p9)  ;;  %s994_s19 = scalar_lea.vmem (!%p242_p9), %s993_s18, 32 }
  0x18   : > { %v512_v28 = vld [vmem:[%s1389_s4] sm:$0xff]  ;;  %v514_v29 = vld [vmem:[%s1389_s4 + $0x10] sm:$0xff]  ;;  %v517_v34 = vld [vmem:[%s1389_s4 + $0x28] sm:$0xff]  ;;  %s272_s22 = scalar_select %p271_p10, %s1120_s6, 1 }
  0x19   : > { %v504_v30 = vld [vmem:[%s1388_s3] sm:$0xff]  ;;  %v518_v35 = vld [vmem:[%s1389_s4 + $0x30] sm:$0xff]  ;;  %v519_v36 = vld [vmem:[%s1389_s4 + $0x38] sm:$0xff] }
  0x1a   : > { %409 = vperm.xlu0 %974, %v281_v6   ;;  %975 = vset.pattern.permute.xlu1 %v1052_v2  ;;  %v508_v31 = vld [vmem:[%s1388_s3 + $0x20] sm:$0xff]  ;;  %v704_v37 = vld [vmem:[%s1390_s5 + $0x30] sm:$0xff]  ;;  %s851_s23 = sshll.u32 %s272_s22, 2 }
  0x1b   : > { %393 = vperm.xlu1 %975, %v277_v5   ;;  %895 = vmatprep.mubr.msk.f32.mxu0 %vm560_vm0, %v504_v30  ;;  %v698_v32 = vld [vmem:[%s1390_s5] sm:$0xff]  ;;  %s274_s30 = scalar_lea.vmem %s1385_s0, %s851_s23 }
  0x1c   : > { %901 = vmatprep.mubr.msk.f32.mxu1 %vm560_vm0, %v508_v31  ;;  %v516_v33 = vld [vmem:[%s1389_s4 + $0x20] sm:$0xff] }
  0x1d   : > { %v767_v38 = vld [vmem:[#allocation2] sm:$0x1] }
  0x1e   : > { %982 = vset.pattern.permute.xlu0 %v1053_v3  ;;  %v275_v52 = vld [vmem:[%s274_s30] sm:$0x7]  ;;  %s270_s30 = scalar_lea.vmem [#allocation3], %s269_s24 }
  0x1f   : > { %353 = vperm.xlu0 %982, %v280_v7   ;;  %976 = vset.pattern.permute.xlu1 %v1054_v8  ;;  %v1276_v54 = vrot.slane %v275_v52, %v370_v50  ;;  %v1281_v56 = vrot.slane %v275_v52, %v326_v51  ;;  %v1285_v61 = vrot.slane %v275_v52, %v422_v55  ;;  %s792_s9 = sshll.u32 %s270_s30, 4  ;;  %s1345_s9 = int_to_ptr.vmem [resolvable:$true] %s792_s9 }
  0x20   : > { %296 = vperm.xlu1 %976, %v278_v4   ;;  %s988_s6 = scalar_lea.vmem %s1345_s9, 16  ;;  %p995_p0 = scmp.lt.s32.totalorder %s1345_s9, %s993_s18 }
  0x21   : > { %p989_p11 = scmp.ne.s32.totalorder %s1345_s9, %s988_s6  ;;  %p996_p1 = scmp.lt.s32.totalorder %s994_s19, %s988_s6 }
  0x23   : > { %365 = vperm.xlu0 %982, %v283_v9   ;;  %p990_p12 = pnand %p989_p11, %p1137_p5  ;;  %p997_p2 = por %p996_p1, %p995_p0 }
  0x24   : > { %977 = vset.pattern.permute.xlu1 %v1053_v3 }
  0x25   : > { %345 = vperm.xlu1 %977, %v278_v4   ;;  %p991_p13 = pneg %p990_p12 }
  0x27   : > { %985 = vset.pattern.permute.xlu0 %v1054_v8  ;;  %p998_p3 = pnand %p997_p2, %p991_p13 }
  0x28   : > { %286 = vperm.xlu0 %985, %v276_v1  }
  0x29   : > { %349 = vperm.xlu1 %977, %v279_v10  }
  0x2c   : > { %291 = vperm.xlu0 %985, %v277_v5  }
  0x2d   : > { %978 = vset.pattern.permute.xlu1 %v1052_v2 }
  0x2e   : > { %401 = vperm.xlu1 %978, %v279_v10  }
  0x30   : > { %301 = vperm.xlu0 %985, %v279_v10  }
  0x32   : > { %979 = vset.pattern.permute.xlu1 %v1054_v8 }
  0x33   : > { %450 = vperm.xlu1 %979, %v440_v11  }
  0x34   : > { %455 = vperm.xlu0 %985, %v441_v12  }
  0x37   : > { %306 = vperm.xlu1 %979, %v280_v7  }
  0x38   : > { %316 = vperm.xlu0 %985, %v282_v13  }
  0x3b   : > { %311 = vperm.xlu1 %979, %v281_v6  }
  0x3c   : > { %470 = vperm.xlu0 %985, %v444_v14  }
  0x3f   : > { %980 = vset.pattern.permute.xlu1 %v1053_v3 }
  0x40   : > { %485 = vperm.xlu0 %985, %v447_v15   ;;  %357 = vperm.xlu1 %980, %v281_v6  }
  0x44   : > { %527 = vperm.xlu0 %985, %v513_v16   ;;  %981 = vset.pattern.permute.xlu1 %v1052_v2 }
  0x45   : > { %405 = vperm.xlu1 %981, %v280_v7  }
  0x48   : > { %537 = vperm.xlu0 %985, %v515_v17  }
  0x49   : > { %983 = vset.pattern.permute.xlu1 %v1054_v8 }
  0x4a   : > { %460 = vperm.xlu1 %983, %v442_v18  }
  0x4c   : > { %713 = vperm.xlu0 %985, %v699_v19  }
  0x4e   : > { %465 = vperm.xlu1 %983, %v443_v20  }
  0x50   : > { %718 = vperm.xlu0 %985, %v700_v21  }
  0x52   : > { %321 = vperm.xlu1 %983, %v283_v9  }
  0x54   : > { %723 = vperm.xlu0 %985, %v701_v22  }
  0x56   : > { %984 = vset.pattern.permute.xlu1 %v1053_v3 }
  0x57   : > { %361 = vperm.xlu1 %984, %v282_v13  }
  0x58   : > { %728 = vperm.xlu0 %985, %v702_v23  }
  0x5b   : > { %986 = vset.pattern.permute.xlu1 %v1052_v2 }
  0x5c   : > { %733 = vperm.xlu0 %985, %v703_v24   ;;  %413 = vperm.xlu1 %986, %v282_v13  }
  0x60   : > { %743 = vperm.xlu0 %985, %v705_v25   ;;  %417 = vperm.xlu1 %986, %v283_v9  }
  0x64   : > { %987 = vset.pattern.permute.xlu1 %v1054_v8 }
  0x65   : > { %475 = vperm.xlu1 %987, %v445_v26  }
  0x69   : > { %480 = vperm.xlu1 %987, %v446_v27  }
  0x6d   : > { %522 = vperm.xlu1 %987, %v512_v28  }
  0x71   : > { %532 = vperm.xlu1 %987, %v514_v29  }
  0x75   : > { %708 = vperm.xlu1 %987, %v698_v32  }
  0x79   : > { %542 = vperm.xlu1 %987, %v516_v33  }
  0x7d   : > { %547 = vperm.xlu1 %987, %v517_v34  }
  0x81   : > { %552 = vperm.xlu1 %987, %v518_v35  }
  0x85   : > { %557 = vperm.xlu1 %987, %v519_v36  }
  0x89   : > { %738 = vperm.xlu1 %987, %v704_v37  }
  0x8d   : > { %770 = vperm.xlu1 %987, %v767_v38  }
  0x91   : > { %v338_v39 = vpop.permute.xlu1 %337  ;;  %v390_v40 = vpop.permute.xlu0 %389 }
  0x92   : > { %v372_v60 = vmul.f32 %v1276_v54, %v338_v39  ;;  %v424_v1 = vmul.f32 %v1285_v61, %v390_v40 }
  0x95   : > { %v342_v41 = vpop.permute.xlu1 %341  ;;  %v398_v42 = vpop.permute.xlu0 %397 }
  0x96   : > { %v373_v63 = vmul.f32 %v1276_v54, %v342_v41  ;;  %v426_v23 = vmul.f32 %v1285_v61, %v398_v42 }
  0x99   : > { %v1262_v43 = vpop.permute.xlu0 %409 }
  0x9a   : > { %v394_v44 = vpop.permute.xlu1 %393 }
  0x9b   : > { %v425_v6 = vmul.f32 %v1285_v61, %v394_v44 }
  0x9e   : > { %v1265_v46 = vpop.permute.xlu0 %353 }
  0x9f   : > { %v297_v48 = vpop.permute.xlu1 %296  ;;  %v376_v39 = vmul.f32 %v1276_v54, %v1265_v46 }
  0xa0   : > { %v330_v20 = vmul.f32 %v1281_v56, %v297_v48 }
  0xa2   : > { %v1272_v49 = vpop.permute.xlu0 %365 }
  0xa4   : > { %v346_v53 = vpop.permute.xlu1 %345 }
  0xa5   : > { %v374_v19 = vmul.f32 %v1276_v54, %v346_v53  ;;  %v379_v53 = vmul.f32 %v1276_v54, %v1272_v49 }
  0xa7   : > { %v287_v57 = vpop.permute.xlu0 %286  ;;  %v382_v24 = vadd.f32 %v374_v19, %v330_v20  ;;  %v511_v19 = vld [vmem:[%s1388_s3 + $0x38] sm:$0xff] }
  0xa8   : > { %v350_v58 = vpop.permute.xlu1 %349  ;;  %v328_v59 = vmul.f32 %v1281_v56, %v287_v57 }
  0xa9   : > { %v375_v25 = vmul.f32 %v1276_v54, %v350_v58  ;;  %v434_v29 = vadd.f32 %v426_v23, %v382_v24 }
  0xaa   : > { %v380_v2 = vadd.f32 %v372_v60, %v328_v59  ;;  %v429_v60 = vmul.f32 %v1285_v61, %v1262_v43 }
  0xab   : > { %v292_v62 = vpop.permute.xlu0 %291 }
  0xac   : > { %v329_v0 = vmul.f32 %v1281_v56, %v292_v62  ;;  %v432_v7 = vadd.f32 %v424_v1, %v380_v2 }
  0xad   : > { %v402_v3 = vpop.permute.xlu1 %401 }
  0xae   : > { %v381_v4 = vadd.f32 %v373_v63, %v329_v0  ;;  %v427_v28 = vmul.f32 %v1285_v61, %v402_v3 }
  0xaf   : > { %v302_v5 = vpop.permute.xlu0 %301 }
  0xb0   : > { %v433_v9 = vadd.f32 %v425_v6, %v381_v4  ;;  %v331_v21 = vmul.f32 %v1281_v56, %v302_v5 }
  0xb2   : > { %v451_v8 = vpop.permute.xlu1 %450  ;;  %v383_v26 = vadd.f32 %v375_v25, %v331_v21 }
  0xb3   : > { %v488_v10 = vadd.f32 %v451_v8, %v432_v7  ;;  %v456_v11 = vpop.permute.xlu0 %455 }
  0xb4   : > { %v489_v12 = vadd.f32 %v456_v11, %v433_v9  ;;  %v435_v31 = vadd.f32 %v427_v28, %v383_v26 }
  0xb5   : > { %v496_v13 = vmax.f32 %v488_v10, 0.0 }
  0xb6   : > { %v497_v14 = vmax.f32 %v489_v12, 0.0  ;;  %v307_v15 = vpop.permute.xlu1 %306 }
  0xb7   : > { %v332_v40 = vmul.f32 %v1281_v56, %v307_v15  ;;  %v317_v41 = vpop.permute.xlu0 %316  ;;  %v509_v15 = vld [vmem:[%s1388_s3 + $0x28] sm:$0xff] }
  0xb8   : > { %v907_v16 = vpack.c.bf16 %v497_v14, %v496_v13  ;;  %v334_v0 = vmul.f32 %v1281_v56, %v317_v41 }
  0xb9   : > { %v384_v48 = vadd.f32 %v376_v39, %v332_v40 }
  0xba   : > { %v312_v17 = vpop.permute.xlu1 %311  ;;  %908 = vmatprep.subr.bf16.mxu0 %v907_v16  ;;  %923 = vmatprep.subr.bf16.mxu1 %v907_v16 }
  0xbb   : > { %910 = vmatpush3.bf16.msra.mxu0 %v907_v16  ;;  %927 = vmatpush3.bf16.msra.mxu1 %v907_v16  ;;  %v333_v50 = vmul.f32 %v1281_v56, %v312_v17  ;;  %v471_v46 = vpop.permute.xlu0 %470  ;;  %v506_v16 = vld [vmem:[%s1388_s3 + $0x10] sm:$0xff] }
  0xbc   : > { %v510_v17 = vld [vmem:[%s1388_s3 + $0x30] sm:$0xff] }
  0xbf   : > { %v358_v18 = vpop.permute.xlu1 %357  ;;  %v486_v7 = vpop.permute.xlu0 %485 }
  0xc0   : > { %v377_v42 = vmul.f32 %v1276_v54, %v358_v18  ;;  %v507_v18 = vld [vmem:[%s1388_s3 + $0x18] sm:$0xff] }
  0xc2   : > { %v385_v55 = vadd.f32 %v377_v42, %v333_v50 }
  0xc3   : > { %v528_v21 = vpop.permute.xlu0 %527 }
  0xc4   : > { %v406_v22 = vpop.permute.xlu1 %405  ;;  %v437_v4 = vadd.f32 %v429_v60, %v385_v55 }
  0xc5   : > { %v428_v44 = vmul.f32 %v1285_v61, %v406_v22 }
  0xc7   : > { %v436_v57 = vadd.f32 %v428_v44, %v384_v48  ;;  %v538_v23 = vpop.permute.xlu0 %537 }
  0xc9   : > { %v461_v27 = vpop.permute.xlu1 %460  ;;  %v492_v1 = vadd.f32 %v471_v46, %v436_v57 }
  0xca   : > { %v490_v30 = vadd.f32 %v461_v27, %v434_v29 }
  0xcb   : > { %v500_v9 = vmax.f32 %v492_v1, 0.0  ;;  %v714_v25 = vpop.permute.xlu0 %713 }
  0xcc   : > { %v498_v34 = vmax.f32 %v490_v30, 0.0 }
  0xcd   : > { %v466_v32 = vpop.permute.xlu1 %465 }
  0xce   : > { %v491_v33 = vadd.f32 %v466_v32, %v435_v31 }
  0xcf   : > { %v719_v27 = vpop.permute.xlu0 %718 }
  0xd0   : > { %v499_v35 = vmax.f32 %v491_v33, 0.0 }
  0xd1   : > { %v322_v36 = vpop.permute.xlu1 %321 }
  0xd2   : > { %v911_v37 = vpack.c.bf16 %v499_v35, %v498_v34  ;;  %v335_v52 = vmul.f32 %v1281_v56, %v322_v36 }
  0xd3   : > { %v724_v29 = vpop.permute.xlu0 %723 }
  0xd4   : > { %912 = vmatprep.subr.bf16.mxu0 %v911_v37  ;;  %924 = vmatprep.subr.bf16.mxu1 %v911_v37  ;;  %v387_v62 = vadd.f32 %v379_v53, %v335_v52 }
  0xd5   : > { %914 = vmatpush3.bf16.msra.mxu0 %v911_v37  ;;  %928 = vmatpush3.bf16.msra.mxu1 %v911_v37 }
  0xd6   : > { %v362_v38 = vpop.permute.xlu1 %361 }
  0xd7   : > { %v378_v63 = vmul.f32 %v1276_v54, %v362_v38  ;;  %v729_v53 = vpop.permute.xlu0 %728 }
  0xd9   : > { %v386_v5 = vadd.f32 %v378_v63, %v334_v0 }
  0xdb   : > { %v414_v45 = vpop.permute.xlu1 %413 }
  0xdc   : > { %v430_v2 = vmul.f32 %v1285_v61, %v414_v45 }
  0xde   : > { %v438_v11 = vadd.f32 %v430_v2, %v386_v5 }
  0xdf   : > { %v418_v58 = vpop.permute.xlu1 %417 }
  0xe0   : > { %v431_v59 = vmul.f32 %v1285_v61, %v418_v58  ;;  %v505_v61 = vld [vmem:[%s1388_s3 + $0x8] sm:$0xff] }
  0xe2   : > { %v439_v3 = vadd.f32 %v431_v59, %v387_v62 }
  0xe4   : > { %v476_v49 = vpop.permute.xlu1 %475  ;;  %v495_v8 = vadd.f32 %v486_v7, %v439_v3 }
  0xe5   : > { %v493_v6 = vadd.f32 %v476_v49, %v437_v4  ;;  %v734_v4 = vpop.permute.xlu0 %733 }
  0xe6   : > { %v503_v54 = vmax.f32 %v495_v8, 0.0 }
  0xe7   : > { %v501_v10 = vmax.f32 %v493_v6, 0.0 }
  0xe8   : > { %v481_v12 = vpop.permute.xlu1 %480 }
  0xe9   : > { %v915_v43 = vpack.c.bf16 %v501_v10, %v500_v9  ;;  %v494_v13 = vadd.f32 %v481_v12, %v438_v11 }
  0xeb   : > { %v502_v14 = vmax.f32 %v494_v13, 0.0  ;;  %916 = vmatprep.subr.bf16.mxu0 %v915_v43  ;;  %925 = vmatprep.subr.bf16.mxu1 %v915_v43 }
  0xec   : > { %918 = vmatpush3.bf16.msra.mxu0 %v915_v43  ;;  %929 = vmatpush3.bf16.msra.mxu1 %v915_v43  ;;  %v523_v20 = vpop.permute.xlu1 %522  ;;  %v744_v43 = vpop.permute.xlu0 %743 }
  0xed   : > { %v919_v56 = vpack.c.bf16 %v503_v54, %v502_v14 }
  0xef   : > { %920 = vmatprep.subr.bf16.mxu0 %v919_v56  ;;  %926 = vmatprep.subr.bf16.mxu1 %v919_v56 }
  0xf0   : > { %922 = vmatpush3.bf16.msra.mxu0 %v919_v56  ;;  %930 = vmatpush3.bf16.msra.mxu1 %v919_v56  ;;  %v533_v22 = vpop.permute.xlu1 %532 }
  0xf3   : > { %896 = vmatmul.mubr.msk.f32.vlgmr.msra.gmra.mrb[0].mxu0 %vm560_vm0, %v505_v61  ;;  %902 = vmatmul.mubr.msk.f32.vlgmr.msra.gmra.mrb[0].mxu1 %vm560_vm0, %v509_v15 }
  0xf4   : > { %898 = vmatprep.mubr.msk.f32.mxu0 %vm560_vm0, %v506_v16  ;;  %904 = vmatprep.mubr.msk.f32.mxu1 %vm560_vm0, %v510_v17  ;;  %v709_v24 = vpop.permute.xlu1 %708 }
  0xf7   : > { %899 = vmatmul.mubr.msk.f32.gmra.mrb[2].mxu0 %vm560_vm0, %v507_v18  ;;  %905 = vmatmul.mubr.msk.f32.gmra.mrb[2].mxu1 %vm560_vm0, %v511_v19 }
  0xf8   : > { %v543_v26 = vpop.permute.xlu1 %542 }
  0xfc   : > { %v548_v28 = vpop.permute.xlu1 %547 }
 0x100   : > { %v553_v36 = vpop.permute.xlu1 %552 }
 0x104   : > { %v558_v63 = vpop.permute.xlu1 %557 }
 0x108   : > { %v739_v10 = vpop.permute.xlu1 %738 }
 0x10c   : > { %v771_v17 = vpop.permute.xlu1 %770 }
 0x10d   : > { %v776_v19 = vrot.slane %v771_v17, %v326_v51 }
 0x1c6   : > { %v897_v30 = vpop.f32.mrb[0].mxu0  ;;  %v903_v31 = vpop.f32.mrb[0].mxu1 }
 0x1c7   : > { %v657_v32 = vadd.f32 %v897_v30, %v528_v21  ;;  %v651_v33 = vpop.f32.mrb[1].mxu0  ;;  %v671_v34 = vpop.f32.mrb[1].mxu1  ;;  %v677_v55 = vadd.f32 %v903_v31, %v548_v28 }
 0x1c8   : > { %v652_v35 = vadd.f32 %v651_v33, %v523_v20  ;;  %v672_v50 = vadd.f32 %v671_v34, %v543_v26 }
 0x1c9   : > { %v691_v37 = vmax.f32 %v657_v32, 0.0  ;;  %v695_v0 = vmax.f32 %v677_v55, 0.0 }
 0x1ca   : > { %v690_v38 = vmax.f32 %v652_v35, 0.0  ;;  %v900_v39 = vpop.f32.mrb[2].mxu0  ;;  %v906_v40 = vpop.f32.mrb[2].mxu1  ;;  %v694_v59 = vmax.f32 %v672_v50, 0.0 }
 0x1cb   : > { %v747_v41 = vmul.f32 %v714_v25, %v691_v37  ;;  %v667_v42 = vadd.f32 %v900_v39, %v538_v23  ;;  %v661_v44 = vpop.f32.mrb[3].mxu0  ;;  %v681_v45 = vpop.f32.mrb[3].mxu1  ;;  %v687_v2 = vadd.f32 %v906_v40, %v558_v63  ;;  %v751_v7 = vmul.f32 %v734_v4, %v695_v0 }
 0x1cc   : > { %v746_v48 = vmul.f32 %v709_v24, %v690_v38  ;;  %v662_v52 = vadd.f32 %v661_v44, %v533_v22  ;;  %v682_v62 = vadd.f32 %v681_v45, %v553_v36  ;;  %v750_v49 = vmul.f32 %v729_v53, %v694_v59 }
 0x1cd   : > { %v693_v58 = vmax.f32 %v667_v42, 0.0  ;;  %v697_v8 = vmax.f32 %v687_v2, 0.0 }
 0x1ce   : > { %v754_v57 = vadd.f32 %v747_v41, %v746_v48  ;;  %v692_v46 = vmax.f32 %v662_v52, 0.0  ;;  %v696_v6 = vmax.f32 %v682_v62, 0.0 }
 0x1cf   : > { %v749_v1 = vmul.f32 %v724_v29, %v693_v58  ;;  %v753_v13 = vmul.f32 %v744_v43, %v697_v8 }
 0x1d0   : > { %v748_v60 = vmul.f32 %v719_v27, %v692_v46  ;;  %v752_v11 = vmul.f32 %v739_v10, %v696_v6 }
 0x1d2   : > { %v755_v3 = vadd.f32 %v754_v57, %v748_v60 }
 0x1d4   : > { %v756_v5 = vadd.f32 %v755_v3, %v749_v1 }
 0x1d6   : > { %v757_v9 = vadd.f32 %v756_v5, %v750_v49 }
 0x1d8   : > { %v758_v12 = vadd.f32 %v757_v9, %v751_v7 }
 0x1da   : > { %v759_v14 = vadd.f32 %v758_v12, %v752_v11 }
 0x1dc   : > { %v760_v54 = vadd.f32 %v759_v14, %v753_v13 }
 0x1de   : > { %v761_v56 = vrot.slane %v760_v54, 4 }
 0x1e0   : > { %v762_v61 = vadd.f32 %v761_v56, %v760_v54 }
 0x1e2   : > { %v763_v15 = vrot.slane %v762_v61, 2 }
 0x1e4   : > { %v764_v16 = vadd.f32 %v763_v15, %v762_v61 }
 0x1e6   : > { %v765_v18 = vrot.slane %v764_v16, 1 }
 0x1e8   : > { %v766_v20 = vadd.f32 %v765_v18, %v764_v16 }
 0x1ea   : > { %v777_v21 = vadd.f32 %v776_v19, %v766_v20 }
 0x1ec   : > { %778 = vst [vmem:[%s270_s30] sm:$0x1] %v777_v21 }
 0x1ed   : > { %1001 = shalt.err (!%p998_p3)
}
 0x1ee   : > { %s1002_s20 = scalar_lea.hbm %s1343_s15, 16  ;;  %s1006_s23 = scalar_lea.hbm %s1392_s7, 32 }
 0x1ef   : > { %p1003_p4 = scmp.ne.s32.totalorder %s1343_s15, %s1002_s20  ;;  %p1007_p9 = scmp.lt.u32.totalorder %s1343_s15, %s1392_s7 }
 0x1f0   : > { %p1008_p10 = scmp.lt.u32.totalorder %s1006_s23, %s1002_s20  ;;  %p1010_p12 = scmp.lt.u32.totalorder %s1002_s20, %s1343_s15 }
 0x1f1   : > { %p1004_p7 = pnand %p1003_p4, %p1137_p5 }
 0x1f2   : > { %p1009_p11 = por %p1008_p10, %p1007_p9 }
 0x1f3   : > { %p1005_p8 = pneg %p1004_p7 }
 0x1f4   : > { %p1011_p13 = por %p1010_p12, %p1009_p11 }
 0x1f6   : > { %p1012_p0 = pnand %p1011_p13, %p1005_p8 }
 0x1f8   : > { %1015 = shalt.err (!%p1012_p0)
}
 0x1f9   : > { %931 = dma.vmem_to_hbm [thread:$0]  (%p1137_p5), %s1345_s9, 16, %s1343_s15, %s780_s16  }
 0x1fa PF: > { %p937_p1 = scmp.ge.s32.totalorder %s1050_s29, 2  ;;  %s804_s30 = sand.u32 1, %s1038_s26  }
 0x1fb   : > { %s805_s10 = scalar_lea.sflag [#allocation4], %s804_s30 }
 0x1fc   : > { %p934_p2 = pnand %p937_p1, %p1141_p6 }
 0x1fe   : > { %1033 = dma.done.wait (!%p934_p2), %s805_s10, 16  }
 0x1ff   : > { %1035 = vsyncadd (!%p934_p2), %s805_s10, 4294967280  ;;  %p19_p3 = scmp.ge.s32.totalorder %s1124_s8, 4   ;;  %s1395_s26 = smov %s1042_s27 }
 0x200   : > { %s1396_s27 = smov %s1046_s28  ;;  %s1397_s28 = smov %s1135_s11 }
 0x201   : > { %s1398_s29 = smov %s1124_s8  ;;  %21 = sbr.rel (!%p19_p3) target bundleno = 6 (0x6), region = 83 }
 0x208   :  { %809 = vsyncpa [#allocation4], 1 }
 0x209   :  { %811 = vsyncpa [#allocation4 + $0x1], 1 }

</bundles_post_ra>
